<compile_context>
chip_gen: v7x
topology: tpu7x:2x2x1
jax: 0.10.0
libtpu: 0.0.40
codegen_flags: <defaults>
</compile_context>

<pallas_src>
import functools
import math

import jax
import jax.numpy as jnp
from jax import lax
from jax.experimental import pallas as pl
from jax.experimental.pallas import tpu as pltpu

_LANES = 128
_STRIP_ROWS = 512           # (512, 128) f32 strip = 256 KiB of live values
_ACC_ROWS = 32              # 4 independent (8,128) f32 vregs of partial sums
_MAX_BLOCK_ROWS = 16384     # 8 MiB f32 per buffer, 16 MiB double-buffered
_VMEM_LIMIT_BYTES = 32 * 1024 * 1024


def _cdiv(a, b):
    return -(-a // b)


def _round_up(a, b):
    return _cdiv(a, b) * b


def _per_element_loss(x, gan_type, target_val, sign):
    """Elementwise loss on an f32 tile (gan_type is a python string, baked in)."""
    if gan_type == "gan":          # also covers 'ragan' (identical math): BCEWithLogits
        # Numerically stable: max(x,0) - x*t + log(1 + exp(-|x|))
        # TODO(synk): on v7x the 2 EUP transcendentals/element can bind before HBM;
        # a bf16 / single-transcendental softplus path would restore the roofline.
        t = jnp.float32(target_val)
        return jnp.maximum(x, 0.0) - x * t + jnp.log1p(jnp.exp(-jnp.abs(x)))
    elif gan_type == "lsgan":      # MSELoss
        d = x - jnp.float32(target_val)
        return d * d
    elif gan_type == "wgan-gp":    # -mean(x) if real else mean(x)
        return jnp.float32(sign) * x
    raise NotImplementedError(f"GAN type [{gan_type}] is not found")


def _gan_loss_kernel(x_ref, o_ref, *, gan_type, target_val, sign,
                     block_rows, strip_rows, acc_rows, steps, rows_valid,
                     needs_mask):
    c = pl.program_id(0)   # core-split axis ("parallel")
    i = pl.program_id(1)   # reduction axis ("arbitrary")

    @pl.when(i == 0)
    def _():
        o_ref[...] = jnp.zeros_like(o_ref)

    n_strips = block_rows // strip_rows   # python int (static)
    groups = strip_rows // acc_rows       # python int (static)

    if needs_mask:
        # Logical (un-clamped) first row of this block: rows >= rows_valid are
        # boundary garbage or duplicate-block rows and must contribute zero.
        block_row0 = (c * steps + i) * block_rows
        row_ids = lax.broadcasted_iota(jnp.int32, (strip_rows, _LANES), 0)

    def body(s, acc):
        r0 = s * strip_rows
        if not isinstance(r0, int):
            r0 = pl.multiple_of(r0, strip_rows)
        x = x_ref[pl.ds(r0, strip_rows), :].astype(jnp.float32)
        per = _per_element_loss(x, gan_type, target_val, sign)
        if needs_mask:
            lim = jnp.clip(rows_valid - (block_row0 + r0), 0, strip_rows)
            per = jnp.where(row_ids < lim, per, 0.0)
        # Fold the strip down to (acc_rows, 128): short add chains with 4-way
        # ILP across the accumulator's vreg rows (no 100s-deep serial chain).
        return acc + per.reshape(groups, acc_rows, _LANES).sum(axis=0)

    acc = jnp.zeros((acc_rows, _LANES), jnp.float32)
    if n_strips == 1:
        acc = body(0, acc)
    else:
        acc = lax.fori_loop(0, n_strips, body, acc)

    o_ref[...] += acc


@functools.lru_cache(maxsize=None)
def _build_gan_loss_fn(gan_type, target_val, sign, n, dtype_name,
                       block_rows, strip_rows, acc_rows, n_split, steps,
                       num_blocks):
    """Build (and jit) reshape -> pallas -> finalize for one configuration."""
    rows_valid = _cdiv(n, _LANES)
    pad_lanes = rows_valid * _LANES - n
    needs_mask = (n_split * steps * block_rows) != rows_valid

    # Analytic contribution of the (<128) explicit zero lane-padding elements.
    if pad_lanes and gan_type == "gan":
        pad_corr = pad_lanes * math.log(2.0)          # softplus(0) = log 2
    elif pad_lanes and gan_type == "lsgan":
        pad_corr = pad_lanes * (target_val ** 2)      # (0 - t)^2
    else:
        pad_corr = 0.0

    kernel = functools.partial(
        _gan_loss_kernel, gan_type=gan_type, target_val=target_val, sign=sign,
        block_rows=block_rows, strip_rows=strip_rows, acc_rows=acc_rows,
        steps=steps, rows_valid=rows_valid, needs_mask=needs_mask)

    itemsize = jnp.dtype(dtype_name).itemsize
    flops_per = {"gan": 6, "lsgan": 3, "wgan-gp": 1}[gan_type]
    cost = pl.CostEstimate(
        flops=flops_per * n,
        transcendentals=(2 * n if gan_type == "gan" else 0),
        bytes_accessed=n * itemsize + n_split * acc_rows * _LANES * 4)

    nb = num_blocks

    def in_idx(c, i):
        # Clamp so no DMA ever starts fully outside the array; logical blocks
        # that exist only because of grid round-up are fully masked in-kernel.
        return (jnp.minimum(c * steps + i, nb - 1), 0)

    call = pl.pallas_call(
        kernel,
        out_shape=jax.ShapeDtypeStruct((n_split * acc_rows, _LANES), jnp.float32),
        grid_spec=pltpu.PrefetchScalarGridSpec(
            num_scalar_prefetch=0,
            grid=(n_split, steps),
            in_specs=[pl.BlockSpec((block_rows, _LANES), in_idx)],
            # Output block depends only on the core-split axis -> stays VMEM
            # resident across the reduction axis (accumulator pattern).
            out_specs=pl.BlockSpec((acc_rows, _LANES), lambda c, i: (c, 0)),
        ),
        compiler_params=pltpu.CompilerParams(
            # TODO(synk): on v7x switch the split axis to pltpu.CORE_PARALLEL
            # (or pl.core_map over a tensorcore mesh); kept PARALLEL so the
            # same build also compiles on single-TensorCore v5e/v6e.
            dimension_semantics=(pltpu.PARALLEL, pltpu.ARBITRARY),
            vmem_limit_bytes=_VMEM_LIMIT_BYTES),
        cost_estimate=cost,
    )

    def fn(x_flat):
        if pad_lanes:
            # TODO(synk): this pad is one extra HBM pass for non-128-multiple
            # sizes; block-level padding is already handled mask-only (no copy).
            x_flat = jnp.pad(x_flat, (0, pad_lanes))
        x2d = x_flat.reshape(rows_valid, _LANES)     # free bitcast when no pad
        partial = call(x2d)                          # (n_split*acc_rows, 128) f32
        total = jnp.sum(partial) - jnp.float32(pad_corr)
        return total / jnp.float32(n)

    return jax.jit(fn)


class GANLoss:
    """JAX/Pallas port of codes/loss/GANloss.py::GANLoss (forward only)."""

    def __init__(self, gan_type, target_real_label=1.0, target_fake_label=0.0):
        self.gan_type = gan_type.lower()
        self.real_label_val = float(target_real_label)
        self.fake_label_val = float(target_fake_label)
        if self.gan_type not in ("gan", "ragan", "lsgan", "wgan-gp"):
            raise NotImplementedError(
                "GAN type [{:s}] is not found".format(self.gan_type))

    def __call__(self, x, target_is_real: bool):
        gan_type = self.gan_type
        if gan_type == "wgan-gp":
            target_val = 0.0   # unused
            sign = -1.0 if target_is_real else 1.0
        else:
            target_val = (self.real_label_val if target_is_real
                          else self.fake_label_val)
            sign = 1.0         # unused

        x = jnp.asarray(x)
        n = int(x.size)
        dtype = jnp.dtype(x.dtype)

        # ---- tiling parameters (python ints, baked into the cached build) ----
        rows = _cdiv(n, _LANES)
        # dtype sublane packing multiple (f32:8, bf16:16, int8/fp8:32)
        sub = {1: 32, 2: 16}.get(dtype.itemsize, 8)

        if rows < _STRIP_ROWS:
            # Small input: a single block / single strip; no inner loop.
            block_rows = _round_up(max(rows, 1), sub)
            strip_rows = block_rows
            acc_rows = block_rows
            n_split, steps, num_blocks = 1, 1, 1
        else:
            # Split across 2 TensorCores when there is enough work (2x on a
            # 2-TC chip; a trivial serial loop on single-TC parts).
            n_split = 2 if rows >= 2 * _STRIP_ROWS else 1
            # Adaptive block size: aim for ~4 pipeline steps per core, rounded
            # to the strip size, capped so double-buffering fits in VMEM.
            block_rows = min(_MAX_BLOCK_ROWS,
                             max(_STRIP_ROWS,
                                 _round_up(_cdiv(rows, n_split * 4), _STRIP_ROWS)))
            strip_rows = _STRIP_ROWS
            acc_rows = _ACC_ROWS
            num_blocks = _cdiv(rows, block_rows)
            steps = _cdiv(num_blocks, n_split)

        key_type = "gan" if gan_type == "ragan" else gan_type  # identical math
        fn = _build_gan_loss_fn(
            key_type, float(target_val), float(sign), n, dtype.name,
            block_rows, strip_rows, acc_rows, n_split, steps, num_blocks)
        return fn(x.reshape(-1))


# ---------------- pure-JAX reference for verification ----------------
def _ref_gan_loss(x, target_is_real, gan_type, real_val=1.0, fake_val=0.0):
    gan_type = gan_type.lower()
    x = x.astype(jnp.float32)
    if gan_type == "wgan-gp":
        return -x.mean() if target_is_real else x.mean()
    t = jnp.full_like(x, real_val if target_is_real else fake_val)
    if gan_type in ("gan", "ragan"):
        per = jnp.maximum(x, 0.0) - x * t + jnp.log1p(jnp.exp(-jnp.abs(x)))
        return per.mean()
    elif gan_type == "lsgan":
        return ((x - t) ** 2).mean()
    raise NotImplementedError


if __name__ == "__main__":
    key = jax.random.PRNGKey(0)
    k1, k2, k3 = jax.random.split(key, 3)
    # Typical discriminator output (NCHW logits / scores), lane-aligned size.
    x = jax.random.normal(k1, (2, 4, 16, 16), dtype=jnp.float32) * 2.0
    # Ragged (non-multiple-of-128) size: exercises lane-pad correction + row mask.
    x_ragged = jax.random.normal(k2, (2, 3, 7, 5), dtype=jnp.float32) * 2.0
    # Larger input: exercises the strip fori_loop, 2-way split and block mask.
    x_big = jax.random.normal(k3, (16, 16, 63, 64), dtype=jnp.float32) * 2.0

    cases = []
    for gan_type in ("gan", "ragan", "lsgan", "wgan-gp"):
        for target_is_real in (True, False):
            cases.append((gan_type, target_is_real, x, "x"))
            cases.append((gan_type, target_is_real, x_ragged, "x_ragged"))
    cases.append(("gan", True, x_big, "x_big"))
    cases.append(("wgan-gp", False, x_big, "x_big"))

    ok = True
    for gan_type, target_is_real, xin, name in cases:
        loss_mod = GANLoss(gan_type)
        got = jax.block_until_ready(loss_mod(xin, target_is_real))
        want = _ref_gan_loss(xin, target_is_real, gan_type)
        if not jnp.allclose(got, want, rtol=1e-5, atol=1e-5):
            ok = False
            print(f"MISMATCH {gan_type} real={target_is_real} {name} "
                  f"shape={tuple(xin.shape)}: {got} vs {want}")

    if ok:
        print("KERNEL_OK")
</pallas_src>

<mosaic_0001>
module attributes {stable_mosaic.version = 11 : i64} {
  func.func @_gan_loss_kernel(%arg0: i32, %arg1: i32, %arg2: memref<16x128xf32, #tpu.memory_space<vmem>>, %arg3: memref<16x128xf32, #tpu.memory_space<vmem>>) attributes {dimension_semantics = [#tpu.dimension_semantics<parallel>, #tpu.dimension_semantics<arbitrary>], iteration_bounds = array<i64: 1, 1>, scalar_prefetch = 0 : i64, scratch_operands = 0 : i64, tpu.core_type = #tpu.core_type<tc>, window_params = [{transform_indices = @transform_0, window_bounds = array<i64: 16, 128>}, {transform_indices = @transform_1, window_bounds = array<i64: 16, 128>}]} {
    %c0_i32 = arith.constant 0 : i32
    %0 = arith.cmpi eq, %arg1, %c0_i32 : i32
    %1 = arith.extui %0 : i1 to i32
    %c0_i32_0 = arith.constant 0 : i32
    %2 = arith.cmpi ne, %1, %c0_i32_0 : i32
    scf.if %2 {
      %cst_10 = arith.constant 0.000000e+00 : f32
      %22 = vector.broadcast %cst_10 : f32 to vector<16x128xf32>
      %c0_11 = arith.constant 0 : index
      %c0_12 = arith.constant 0 : index
      %23 = vector.load %arg3[%c0_11, %c0_12] : memref<16x128xf32, #tpu.memory_space<vmem>>, vector<16x128xf32>
      tpu.vector_store %arg3[%c0_11, %c0_12], %22 {strides = array<i32>} : memref<16x128xf32, #tpu.memory_space<vmem>>, vector<16x128xf32>,
    } else {
    }
    %cst = arith.constant 0.000000e+00 : f32
    %3 = vector.broadcast %cst : f32 to vector<16x128xf32>
    %c0 = arith.constant 0 : index
    %c0_1 = arith.constant 0 : index
    %4 = vector.load %arg2[%c0, %c0_1] : memref<16x128xf32, #tpu.memory_space<vmem>>, vector<16x128xf32>
    %cst_2 = arith.constant 0.000000e+00 : f32
    %5 = vector.broadcast %cst_2 : f32 to vector<16x128xf32>
    %6 = arith.maximumf %4, %5 : vector<16x128xf32>
    %cst_3 = arith.constant 1.000000e+00 : f32
    %7 = vector.broadcast %cst_3 : f32 to vector<16x128xf32>
    %8 = arith.mulf %4, %7 : vector<16x128xf32>
    %9 = arith.subf %6, %8 : vector<16x128xf32>
    %10 = math.absf %4 : vector<16x128xf32>
    %cst_4 = arith.constant 0.000000e+00 : f32
    %11 = vector.broadcast %cst_4 : f32 to vector<16x128xf32>
    %12 = arith.subf %11, %10 : vector<16x128xf32>
    %13 = math.exp %12 : vector<16x128xf32>
    %14 = math.log1p %13 : vector<16x128xf32>
    %15 = arith.addf %9, %14 : vector<16x128xf32>
    %16 = vector.shape_cast %15 : vector<16x128xf32> to vector<1x16x128xf32>
    %cst_5 = arith.constant dense<0.000000e+00> : vector<16x128xf32>
    %17 = vector.multi_reduction <add>, %16, %cst_5 [0] : vector<1x16x128xf32> to vector<16x128xf32>
    %18 = arith.addf %3, %17 : vector<16x128xf32>
    %c0_6 = arith.constant 0 : index
    %c0_7 = arith.constant 0 : index
    %19 = vector.load %arg3[%c0_6, %c0_7] : memref<16x128xf32, #tpu.memory_space<vmem>>, vector<16x128xf32>
    %20 = arith.addf %19, %18 : vector<16x128xf32>
    %c0_8 = arith.constant 0 : index
    %c0_9 = arith.constant 0 : index
    %21 = vector.load %arg3[%c0_8, %c0_9] : memref<16x128xf32, #tpu.memory_space<vmem>>, vector<16x128xf32>
    tpu.vector_store %arg3[%c0_8, %c0_9], %20 {strides = array<i32>} : memref<16x128xf32, #tpu.memory_space<vmem>>, vector<16x128xf32>,
    return
  }
  func.func @transform_0(%arg0: i32, %arg1: i32) -> (i32, i32) {
    %c1_i32 = arith.constant 1 : i32
    %0 = arith.muli %arg0, %c1_i32 : i32
    %1 = arith.addi %0, %arg1 : i32
    %c0_i32 = arith.constant 0 : i32
    %2 = arith.minsi %1, %c0_i32 : i32
    %c0_i32_0 = arith.constant 0 : i32
    %c0_i32_1 = arith.constant 0 : i32
    return %2, %c0_i32_0 : i32, i32
  }
  func.func @transform_1(%arg0: i32, %arg1: i32) -> (i32, i32) {
    %c0_i32 = arith.constant 0 : i32
    %c0_i32_0 = arith.constant 0 : i32
    return %arg0, %c0_i32 : i32, i32
  }
}

</mosaic_0001>

<bundles_post_ra>
// kernel: fn.1
= control target key start
LH: loop header
LB: loop body
LE: loop exit
PB: predicated region body
PF: predicated region fallthrough
CT: control target
= control target key end

     0   :  { %6 = vsyncpa [#allocation3], 0  ;;  %s125_s6 = smov [#allocation2]   ;;  %s156_s0 = inlined_call_operand.hbm [shape: f32[16,128], index: 0, kind: input, shape index: {}]   ;;  %s157_s1 = inlined_call_operand.vmem [shape: f32[16,128], index: 1, kind: output, shape index: {}]  }
   0x1   :  { %s18_s7 = sshll.u32 %s125_s6, 4  ;;  %s101_s10 = scalar_lea.hbm %s156_s0, 256  ;;  %s19_s7 = int_to_ptr.vmem [resolvable:$true] %s18_s7 }
   0x2   :  { %p102_p0 = scmp.ne.s32.totalorder %s156_s0, %s101_s10  ;;  %p105_p1 = scmp.lt.u32.totalorder %s101_s10, %s156_s0 }
   0x4   :  { %p107_p2 = pnand %p105_p1, %p102_p0 }
   0x6   :  { %110 = shalt.err (!%p107_p2)
}
   0x7   :  { %s111_s15 = scalar_lea.vmem %s19_s7, 256  ;;  %p116_p4 = scmp.lt.s32.totalorder %s19_s7, %s19_s7 }
   0x8   :  { %p112_p3 = scmp.ne.s32.totalorder %s19_s7, %s111_s15  ;;  %p117_p5 = scmp.lt.s32.totalorder %s111_s15, %s111_s15 }
   0xa   :  { %p118_p6 = por %p117_p5, %p116_p4 }
   0xc   :  { %p119_p7 = pnand %p118_p6, %p112_p3 }
   0xe   :  { %122 = shalt.err (!%p119_p7)
}
   0xf   :  { %s126_s16 = smov 128   ;;  %s127_s17 = smov 8  }
  0x10   :  { %24 = dma.hbm_to_vmem [thread:$0]  %s156_s0, 256, %s19_s7, [#allocation3], %s126_s16, %s126_s16, %s127_s17  }
  0x11   :  { %123 = dma.done.wait [#allocation3], 256  }
  0x12   :  { %124 = vsyncadd [#allocation3], 4294967040  ;;  %v38_v0 = vld [vmem:[#allocation2] sm:$0xff]  ;;  %v39_v1 = vld [vmem:[#allocation2 + $0x8] sm:$0xff] }
  0x13   :  { %v44_v2 = vand.u32 2147483647, %v38_v0  ;;  %v45_v3 = vand.u32 2147483647, %v39_v1  ;;  %v40_v15 = vmax.f32 %v38_v0, 0.0  ;;  %v41_v18 = vmax.f32 %v39_v1, 0.0 }
  0x15   :  { %v46_v4 = vsub.f32 0.0, %v44_v2  ;;  %v47_v5 = vsub.f32 0.0, %v45_v3  ;;  %v42_v22 = vsub.f32 %v40_v15, %v38_v0  ;;  %v43_v26 = vsub.f32 %v41_v18, %v39_v1 }
  0x17   :  { %v48_v6 = vmul.f32 1.442695, %v46_v4  ;;  %v50_v7 = vmul.f32 1.442695, %v47_v5 }
  0x19   :  { %93 = vpow2.f32 %v48_v6 }
  0x1a   :  { %95 = vpow2.f32 %v50_v7 }
  0x23   :  { %v94_v8 = vpop.eup %93 }
  0x24   :  { %v96_v9 = vpop.eup %95  ;;  %v52_v10 = vadd.f32 1.0, %v94_v8  ;;  %v55_v12 = vmul.f32 -0.5, %v94_v8  ;;  %v58_v16 = vand.u32 2147483647, %v94_v8 }
  0x25   :  { %v61_v11 = vadd.f32 1.0, %v96_v9  ;;  %v64_v13 = vmul.f32 -0.5, %v96_v9  ;;  %v67_v19 = vand.u32 2147483647, %v96_v9 }
  0x26   :  { %97 = vlog2.f32 %v52_v10  ;;  %v56_v14 = vadd.f32 1.0, %v55_v12  ;;  %vm59_vm0 = vcmp.lt.f32.partialorder %v58_v16, 0.0004427343 }
  0x27   :  { %99 = vlog2.f32 %v61_v11  ;;  %v65_v17 = vadd.f32 1.0, %v64_v13  ;;  %vm68_vm1 = vcmp.lt.f32.partialorder %v67_v19, 0.0004427343 }
  0x28   :  { %v57_v20 = vmul.f32 %v94_v8, %v56_v14 }
  0x29   :  { %v66_v23 = vmul.f32 %v96_v9, %v65_v17 }
  0x30   :  { %v98_v21 = vpop.eup %97 }
  0x31   :  { %v100_v24 = vpop.eup %99  ;;  %v54_v25 = vmul.f32 0.6931472, %v98_v21 }
  0x32   :  { %v63_v27 = vmul.f32 0.6931472, %v100_v24 }
  0x33   :  { %v60_v28 = vsel %vm59_vm0, %v57_v20, %v54_v25 }
  0x34   :  { %v70_v29 = vadd.f32 %v60_v28, %v42_v22  ;;  %v69_v30 = vsel %vm68_vm1, %v66_v23, %v63_v27 }
  0x35   :  { %v71_v31 = vadd.f32 %v69_v30, %v43_v26 }
  0x36   :  { %80 = vst [vmem:[%s157_s1] sm:$0xff] %v70_v29 }
  0x37   :  { %81 = vst [vmem:[%s157_s1 + $0x8] sm:$0xff] %v71_v31 }
  0x38   :  { %86 = vsyncpa [#allocation3], 1 }

</bundles_post_ra>
